<compile_context>
chip_gen: v6e
topology: v6e:2x2x1
jax: 0.10.0
libtpu: 0.0.40
codegen_flags: <defaults>
</compile_context>

<pallas_src>
import functools

import jax
import jax.numpy as jnp
from jax.experimental import pallas as pl
from jax.experimental.pallas import tpu as pltpu

_LANE = 128


def _round_up(x, m):
    return ((x + m - 1) // m) * m


# ---------------------------------------------------------------------------
# Kernel
# ---------------------------------------------------------------------------
def _policy_kernel(x_ref, w1_ref, b1_ref, w2_ref, b2_ref, out_ref):
    # x_ref:  [tb, in_dim]      (compute dtype)
    # w1_ref: [in_dim, H_pad]   (compute dtype)   b1_ref: [1, H_pad] f32
    # w2_ref: [H_pad, A]        (compute dtype)   b2_ref: [1, A]     f32
    # out_ref:[tb, A] f32
    x = x_ref[...]

    # First Linear: single fused MXU contraction over the concatenated input,
    # f32 accumulation + f32 bias add.
    h = jnp.dot(x, w1_ref[...], preferred_element_type=jnp.float32) + b1_ref[...]

    # ReLU in f32 (VPU f32 path works on every generation).
    h = jnp.maximum(h, 0.0)

    # Cast only at the second dot's input; accumulate in f32.
    h = h.astype(w2_ref.dtype)
    y = jnp.dot(h, w2_ref[...], preferred_element_type=jnp.float32) + b2_ref[...]

    out_ref[...] = y.astype(out_ref.dtype)


# ---------------------------------------------------------------------------
# One-time parameter preprocessing (do NOT redo this per forward call)
# ---------------------------------------------------------------------------
def prepare_params(params, compute_dtype=jnp.bfloat16):
    """Pad hidden to a lane-dense 128 and pre-cast weights to the MXU dtype."""
    w1, b1, w2, b2 = params          # w1:[in_dim,H], b1:[H], w2:[H,A], b2:[A]
    in_dim, hidden = w1.shape
    action_dim = w2.shape[1]
    h_pad = _round_up(hidden, _LANE)

    w1p = jnp.zeros((in_dim, h_pad), jnp.float32).at[:, :hidden].set(w1)
    b1p = jnp.zeros((1, h_pad), jnp.float32).at[:, :hidden].set(b1.reshape(1, -1))
    w2p = jnp.zeros((h_pad, action_dim), jnp.float32).at[:hidden, :].set(w2)
    b2p = b2.reshape(1, action_dim).astype(jnp.float32)

    return (w1p.astype(compute_dtype), b1p, w2p.astype(compute_dtype), b2p)


def _pick_batch_tile(batch, block_batch):
    """Batch tile (multiple of 8); >=2 grid steps when possible for v7x's 2 TCs."""
    b8 = _round_up(max(batch, 1), 8)
    if b8 >= 16:
        tb = min(block_batch, _round_up(pl.cdiv(b8, 2), 8))
    else:
        tb = b8
    tb = max(tb, 8)
    b_pad = _round_up(b8, tb)
    return tb, b_pad


# ---------------------------------------------------------------------------
# Forward wrapper (jit this so concat + pad + cast fuse into one pass over x)
# ---------------------------------------------------------------------------
@functools.partial(jax.jit, static_argnames=("block_batch",))
def meta_conditioned_policy(obs, context, prepared_params, *, block_batch=2048):
    """obs: [B, obs_dim], context: [B, context_dim] -> [B, action_dim] (f32)."""
    w1, b1, w2, b2 = prepared_params
    B = obs.shape[0]
    in_dim = obs.shape[1] + context.shape[1]
    h_pad = w1.shape[1]
    action_dim = w2.shape[1]
    compute_dtype = w1.dtype
    cs = jnp.dtype(compute_dtype).itemsize

    # Fuse the concat once; pad batch to a multiple of the tile (zero rows).
    x = jnp.concatenate([obs, context], axis=-1).astype(compute_dtype)
    tb, b_pad = _pick_batch_tile(B, block_batch)
    if b_pad != B:
        x = jnp.pad(x, ((0, b_pad - B), (0, 0)))

    grid = (b_pad // tb,)

    cost = pl.CostEstimate(
        flops=int(2 * b_pad * (in_dim * h_pad + h_pad * action_dim)),
        transcendentals=0,
        bytes_accessed=int(
            b_pad * in_dim * cs                                   # x read
            + (in_dim * h_pad + h_pad * action_dim) * cs          # weights
            + (h_pad + action_dim) * 4                            # biases
            + b_pad * action_dim * 4                              # output write
        ),
    )

    out = pl.pallas_call(
        _policy_kernel,
        # Un-padded output feature axis: masked stores beat a 16x f32 writeback.
        out_shape=jax.ShapeDtypeStruct((b_pad, action_dim), jnp.float32),
        grid_spec=pltpu.PrefetchScalarGridSpec(
            num_scalar_prefetch=0,
            grid=grid,
            in_specs=[
                # Activations: tiled on batch (double-buffered by the pipeline).
                pl.BlockSpec((tb, in_dim), lambda i: (i, 0)),
                # Weights / biases: constant index_map -> VMEM-resident after step 0.
                pl.BlockSpec((in_dim, h_pad), lambda i: (0, 0)),
                pl.BlockSpec((1, h_pad), lambda i: (0, 0)),
                pl.BlockSpec((h_pad, action_dim), lambda i: (0, 0)),
                pl.BlockSpec((1, action_dim), lambda i: (0, 0)),
            ],
            out_specs=pl.BlockSpec((tb, action_dim), lambda i: (i, 0)),
        ),
        compiler_params=pltpu.CompilerParams(
            # Batch axis is embarrassingly parallel -> v7x megacore sharding.
            dimension_semantics=("parallel",),
        ),
        cost_estimate=cost,
    )(x, w1, b1, w2, b2)

    return out[:B]


# ---------------------------------------------------------------------------
# Init + pure-JAX reference
# ---------------------------------------------------------------------------
def init_params(key, obs_dim, context_dim, hidden_dim, action_dim):
    """Deterministic init mimicking nn.Linear's uniform(-1/sqrt(fan_in), +)."""
    in_dim = obs_dim + context_dim
    k1, k2, k3, k4 = jax.random.split(key, 4)

    bound1 = 1.0 / jnp.sqrt(in_dim)
    w1 = jax.random.uniform(k1, (in_dim, hidden_dim), jnp.float32, -bound1, bound1)
    b1 = jax.random.uniform(k2, (hidden_dim,), jnp.float32, -bound1, bound1)

    bound2 = 1.0 / jnp.sqrt(hidden_dim)
    w2 = jax.random.uniform(k3, (hidden_dim, action_dim), jnp.float32, -bound2, bound2)
    b2 = jax.random.uniform(k4, (action_dim,), jnp.float32, -bound2, bound2)

    return (w1, b1, w2, b2)


def reference_forward(obs, context, params):
    """Pure-JAX f32 reference of the PyTorch forward."""
    w1, b1, w2, b2 = params
    x = jnp.concatenate([obs, context], axis=-1)
    h = jnp.maximum(x @ w1 + b1, 0.0)
    return h @ w2 + b2


if __name__ == "__main__":
    obs_dim, context_dim, hidden_dim, action_dim = 12, 4, 32, 8
    batch = 2

    key = jax.random.PRNGKey(0)
    k_obs, k_ctx, k_params = jax.random.split(key, 3)

    obs = jax.random.normal(k_obs, (batch, obs_dim), jnp.float32)
    context = jax.random.normal(k_ctx, (batch, context_dim), jnp.float32)

    params = init_params(k_params, obs_dim, context_dim, hidden_dim, action_dim)
    ref = reference_forward(obs, context, params)

    # bf16 MXU inputs, f32 accumulation (default fast path).
    # NOTE: bf16 inputs intentionally deviate from PyTorch's f32 matmuls
    # (covered by the looser tolerance below).
    prepped_bf16 = prepare_params(params, compute_dtype=jnp.bfloat16)
    out_bf16 = jax.block_until_ready(
        meta_conditioned_policy(obs, context, prepped_bf16))
    assert out_bf16.shape == (batch, action_dim)
    assert out_bf16.dtype == jnp.float32
    assert jnp.allclose(out_bf16, ref, atol=5e-2, rtol=5e-2)

    # Full-f32 path, tight tolerance (validation only).
    prepped_f32 = prepare_params(params, compute_dtype=jnp.float32)
    out_f32 = jax.block_until_ready(
        meta_conditioned_policy(obs, context, prepped_f32))
    assert jnp.allclose(out_f32, ref, atol=1e-5, rtol=1e-5)

    print("KERNEL_OK")
</pallas_src>

<mosaic_0001>
module attributes {stable_mosaic.version = 11 : i64} {
  func.func @_policy_kernel(%arg0: i32, %arg1: memref<8x16xbf16, #tpu.memory_space<vmem>>, %arg2: memref<16x128xbf16, #tpu.memory_space<vmem>>, %arg3: memref<1x128xf32, #tpu.memory_space<vmem>>, %arg4: memref<128x8xbf16, #tpu.memory_space<vmem>>, %arg5: memref<1x8xf32, #tpu.memory_space<vmem>>, %arg6: memref<8x8xf32, #tpu.memory_space<vmem>>) attributes {dimension_semantics = [#tpu.dimension_semantics<parallel>], iteration_bounds = array<i64: 1>, scalar_prefetch = 0 : i64, scratch_operands = 0 : i64, tpu.core_type = #tpu.core_type<tc>, window_params = [{transform_indices = @transform_0, window_bounds = array<i64: 8, 16>}, {pipeline_mode = #tpu.pipeline_mode<synchronous>, transform_indices = @transform_1, window_bounds = array<i64: 16, 128>}, {pipeline_mode = #tpu.pipeline_mode<synchronous>, transform_indices = @transform_2, window_bounds = array<i64: 1, 128>}, {pipeline_mode = #tpu.pipeline_mode<synchronous>, transform_indices = @transform_3, window_bounds = array<i64: 128, 8>}, {pipeline_mode = #tpu.pipeline_mode<synchronous>, transform_indices = @transform_4, window_bounds = array<i64: 1, 8>}, {transform_indices = @transform_5, window_bounds = array<i64: 8, 8>}]} {
    %c0 = arith.constant 0 : index
    %c0_0 = arith.constant 0 : index
    %0 = vector.load %arg1[%c0, %c0_0] : memref<8x16xbf16, #tpu.memory_space<vmem>>, vector<8x16xbf16>
    %c0_1 = arith.constant 0 : index
    %c0_2 = arith.constant 0 : index
    %1 = vector.load %arg2[%c0_1, %c0_2] : memref<16x128xbf16, #tpu.memory_space<vmem>>, vector<16x128xbf16>
    %cst = arith.constant dense<0.000000e+00> : vector<8x128xf32>
    %2 = tpu.matmul %0, %1, %cst {dimension_numbers = #tpu.dot_dimension_numbers<[1], [0], [0], [1], [0, 0, 1, 1], [], []>} : vector<8x16xbf16>, vector<16x128xbf16>, vector<8x128xf32> -> vector<8x128xf32>
    %c0_3 = arith.constant 0 : index
    %c0_4 = arith.constant 0 : index
    %3 = vector.load %arg3[%c0_3, %c0_4] : memref<1x128xf32, #tpu.memory_space<vmem>>, vector<1x128xf32>
    %4 = vector.broadcast %3 : vector<1x128xf32> to vector<8x128xf32>
    %5 = arith.addf %2, %4 : vector<8x128xf32>
    %cst_5 = arith.constant 0.000000e+00 : f32
    %6 = vector.broadcast %cst_5 : f32 to vector<8x128xf32>
    %7 = arith.maximumf %5, %6 : vector<8x128xf32>
    %8 = arith.truncf %7 : vector<8x128xf32> to vector<8x128xbf16>
    %c0_6 = arith.constant 0 : index
    %c0_7 = arith.constant 0 : index
    %9 = vector.load %arg4[%c0_6, %c0_7] : memref<128x8xbf16, #tpu.memory_space<vmem>>, vector<128x8xbf16>
    %cst_8 = arith.constant dense<0.000000e+00> : vector<8x8xf32>
    %10 = tpu.matmul %8, %9, %cst_8 {dimension_numbers = #tpu.dot_dimension_numbers<[1], [0], [0], [1], [0, 0, 1, 1], [], []>} : vector<8x128xbf16>, vector<128x8xbf16>, vector<8x8xf32> -> vector<8x8xf32>
    %c0_9 = arith.constant 0 : index
    %c0_10 = arith.constant 0 : index
    %11 = vector.load %arg5[%c0_9, %c0_10] : memref<1x8xf32, #tpu.memory_space<vmem>>, vector<1x8xf32>
    %12 = vector.broadcast %11 : vector<1x8xf32> to vector<8x8xf32>
    %13 = arith.addf %10, %12 : vector<8x8xf32>
    %c0_11 = arith.constant 0 : index
    %c0_12 = arith.constant 0 : index
    %14 = vector.load %arg6[%c0_11, %c0_12] : memref<8x8xf32, #tpu.memory_space<vmem>>, vector<8x8xf32>
    tpu.vector_store %arg6[%c0_11, %c0_12], %13 {strides = array<i32>} : memref<8x8xf32, #tpu.memory_space<vmem>>, vector<8x8xf32>,
    return
  }
  func.func @transform_0(%arg0: i32) -> (i32, i32) {
    %c0_i32 = arith.constant 0 : i32
    %c0_i32_0 = arith.constant 0 : i32
    return %arg0, %c0_i32 : i32, i32
  }
  func.func @transform_1(%arg0: i32) -> (i32, i32) {
    %c0_i32 = arith.constant 0 : i32
    %c0_i32_0 = arith.constant 0 : i32
    %c0_i32_1 = arith.constant 0 : i32
    return %c0_i32, %c0_i32_0 : i32, i32
  }
  func.func @transform_2(%arg0: i32) -> (i32, i32) {
    %c0_i32 = arith.constant 0 : i32
    %c0_i32_0 = arith.constant 0 : i32
    %c0_i32_1 = arith.constant 0 : i32
    return %c0_i32, %c0_i32_0 : i32, i32
  }
  func.func @transform_3(%arg0: i32) -> (i32, i32) {
    %c0_i32 = arith.constant 0 : i32
    %c0_i32_0 = arith.constant 0 : i32
    %c0_i32_1 = arith.constant 0 : i32
    return %c0_i32, %c0_i32_0 : i32, i32
  }
  func.func @transform_4(%arg0: i32) -> (i32, i32) {
    %c0_i32 = arith.constant 0 : i32
    %c0_i32_0 = arith.constant 0 : i32
    %c0_i32_1 = arith.constant 0 : i32
    return %c0_i32, %c0_i32_0 : i32, i32
  }
  func.func @transform_5(%arg0: i32) -> (i32, i32) {
    %c0_i32 = arith.constant 0 : i32
    %c0_i32_0 = arith.constant 0 : i32
    return %arg0, %c0_i32 : i32, i32
  }
}

</mosaic_0001>

<bundles_post_ra>
// kernel: meta_conditioned_policy.1
= control target key start
LH: loop header
LB: loop body
LE: loop exit
PB: predicated region body
PF: predicated region fallthrough
CT: control target
= control target key end

     0   :  { %v260_v0 = vmov 0.0   ;;  %vm261_vm0 = vmmov 0   ;;  %vm37_vm1 = vcmask 130048   ;;  %vm194_vm2 = vcmask 64512   ;;  %s331_s1 = inlined_call_operand.vmem [shape: bf16[16,128], index: 1, kind: input, shape index: {}]   ;;  %s332_s0 = inlined_call_operand.vmem [shape: bf16[8,16], index: 0, kind: input, shape index: {}]   ;;  %s333_s3 = inlined_call_operand.vmem [shape: bf16[128,8], index: 3, kind: input, shape index: {}]   ;;  %s334_s2 = inlined_call_operand.vmem [shape: f32[1,128], index: 2, kind: input, shape index: {}]   ;;  %s335_s4 = inlined_call_operand.vmem [shape: f32[1,8], index: 4, kind: input, shape index: {}]   ;;  %s336_s5 = inlined_call_operand.vmem [shape: f32[8,8], index: 5, kind: output, shape index: {}]  }
   0x1   :  { %223 = vmatprep.subr.bf16.mxu0 %v260_v0  ;;  %v251_v1 = vld [vmem:[%s331_s1] sm:$0xff]   ;;  %225 = vmatprep.mubr.msk.bf16.mxu0 %vm261_vm0, %v260_v0  ;;  %v252_v3 = vld [vmem:[%s333_s3 + $0x38] sm:$0xff]   ;;  %v253_v4 = vld [vmem:[%s333_s3 + $0x30] sm:$0xff]  }
   0x2   :  { %v21_v2 = vld [vmem:[%s332_s0] sm:$0xf]  ;;  %229 = vmatprep.subr.bf16.mxu1 %v260_v0  ;;  %245 = vmatprep.mubr.msk.bf16.mxu1 %vm261_vm0, %v260_v0  ;;  %v254_v5 = vld [vmem:[%s333_s3 + $0x28] sm:$0xff]   ;;  %v256_v7 = vld [vmem:[%s333_s3 + $0x18] sm:$0xff]  }
   0x3   :  { %224 = vmatpush3.bf16.msra.mxu0 %v251_v1  ;;  %230 = vmatpush3.bf16.msra.mxu1 %v252_v3  ;;  %v255_v6 = vld [vmem:[%s333_s3 + $0x20] sm:$0xff]   ;;  %v257_v8 = vld [vmem:[%s333_s3 + $0x10] sm:$0xff]   ;;  %v258_v9 = vld [vmem:[%s333_s3 + $0x8] sm:$0xff]  }
   0x4   :  { %231 = vmatprep.subr.bf16.mxu1 %v260_v0  ;;  %v259_v10 = vld [vmem:[%s333_s3] sm:$0xff]  }
   0x5   :  { %v200_v11 = vld [vmem:[%s334_s2] ss:$0 sm:$0xff] }
   0x6   :  { %226 = vmatmul.mubr.msk.bf16.vlgmr.msra.gmra.mxu0 %vm37_vm1, %v21_v2  ;;  %v203_v19 = vld [vmem:[%s335_s4] ss:$0 sm:$0xff] }
   0x7   :  { %232 = vmatpush3.bf16.msra.mxu1 %v253_v4 }
   0x8   :  { %233 = vmatprep.subr.bf16.mxu1 %v260_v0 }
   0xb   :  { %234 = vmatpush3.bf16.msra.mxu1 %v254_v5 }
   0xc   :  { %235 = vmatprep.subr.bf16.mxu1 %v260_v0 }
   0xf   :  { %236 = vmatpush3.bf16.msra.mxu1 %v255_v6 }
  0x10   :  { %237 = vmatprep.subr.bf16.mxu1 %v260_v0 }
  0x13   :  { %238 = vmatpush3.bf16.msra.mxu1 %v256_v7 }
  0x14   :  { %239 = vmatprep.subr.bf16.mxu1 %v260_v0 }
  0x17   :  { %240 = vmatpush3.bf16.msra.mxu1 %v257_v8 }
  0x18   :  { %241 = vmatprep.subr.bf16.mxu1 %v260_v0 }
  0x1b   :  { %242 = vmatpush3.bf16.msra.mxu1 %v258_v9 }
  0x1c   :  { %243 = vmatprep.subr.bf16.mxu1 %v260_v0 }
  0x1f   :  { %244 = vmatpush3.bf16.msra.mxu1 %v259_v10 }
  0xc6   :  { %v75_v12 = vpop.f32.mrf.mxu0 }
  0xc7   :  { %v76_v13 = vadd.f32 %v200_v11, %v75_v12 }
  0xc8   :  { %v227_v14 = vpop.f32.mrf.mxu0 }
  0xc9   :  { %v81_v15 = vmax.f32 %v76_v13, 0.0 }
  0xca   :  { %v78_v16 = vpop.f32.mrf.mxu0 }
  0xcb   :  { %v82_v17 = vpack.c.bf16 %v81_v15, %v81_v15 }
  0xcc   :  { %v228_v18 = vpop.f32.mrf.mxu0 }
  0xcd   :  { %246 = vmatmul.mubr.bf16.vlgmr.msra.gmra.mxu1 %v82_v17 }
 0x18d   :  { %v188_v20 = vpop.f32.mrf.mxu1 }
 0x18e   :  { %v189_v21 = vadd.f32 %v203_v19, %v188_v20 }
 0x18f   :  { %v247_v22 = vpop.f32.mrf.mxu1 }
 0x190   :  { %195 = vst.msk [vmem:[%s336_s5] sm:$0xff] %vm194_vm2, %v189_v21 }
 0x191   :  { %v191_v23 = vpop.f32.mrf.mxu1 }
 0x193   :  { %v248_v24 = vpop.f32.mrf.mxu1 }

</bundles_post_ra>
